<compile_context>
chip_gen: v7x
topology: tpu7x:2x2x1
jax: 0.10.0
libtpu: 0.0.40
codegen_flags: <defaults>
</compile_context>

<pallas_src>
import functools

import numpy as np
import jax
import jax.numpy as jnp
from jax.experimental import pallas as pl
from jax.experimental.pallas import tpu as pltpu


def _sh_constant_factor() -> np.ndarray:
    pi = np.pi
    return np.array(
        [
            1.0 / np.sqrt(4 * pi),
            2 * pi / 3 * np.sqrt(3 / (4 * pi)),
            2 * pi / 3 * np.sqrt(3 / (4 * pi)),
            2 * pi / 3 * np.sqrt(3 / (4 * pi)),
            pi / 4 * 3 * np.sqrt(5 / (12 * pi)),
            pi / 4 * 3 * np.sqrt(5 / (12 * pi)),
            pi / 4 * 3 * np.sqrt(5 / (12 * pi)),
            pi / 4 * (3.0 / 2.0) * np.sqrt(5 / (12 * pi)),
            pi / 4 * (1.0 / 2.0) * np.sqrt(5 / (4 * pi)),
        ],
        dtype=np.float32,
    )


# --------------------------------------------------------------------------
# Kernel
# --------------------------------------------------------------------------
def _sh_light_kernel(w_ref, x_ref, out_ref, mask_ref):
    """Fused SH shading + alpha masking on one (batch, row-tile) block.

    w_ref    : SMEM (B*27,)        pre-weighted, band-folded SH coeffs,
                                   layout [b*27 + k*3 + c]
    x_ref    : VMEM (1, 4, tR, 128) planar RGB + alpha (roles of
                                   normal_images and the rasterizer alpha)
    out_ref  : VMEM (1, 3, tR, 128) shaded, masked image
    mask_ref : VMEM (1, 1, tR, 128) coverage mask (alpha > 0), bool or uint8
    """
    b = pl.program_id(0)

    n0 = x_ref[0, 0]     # (tR, 128)
    n1 = x_ref[0, 1]
    n2 = x_ref[0, 2]
    alpha = x_ref[0, 3]

    def w(k, c):
        # scalar from SMEM; already multiplied by constant_factor and
        # band-folded (w0 -= w8 ; w8 *= 3) in the wrapper.
        return w_ref[b * 27 + k * 3 + c]

    # Bands 0 (constant) and 1 (n0) folded into the accumulator init — no
    # jnp.full_like broadcasts, and band 8 is reduced to n2*n2 below.
    acc0 = n0 * w(1, 0) + w(0, 0)
    acc1 = n0 * w(1, 1) + w(0, 1)
    acc2 = n0 * w(1, 2) + w(0, 2)

    def basis_fn(k):
        # Same band ordering as the PyTorch module's add_SHlight.
        if k == 2:
            return n1
        if k == 3:
            return n2
        if k == 4:
            return n0 * n1
        if k == 5:
            return n0 * n2
        if k == 6:
            return n1 * n2
        if k == 7:
            return n0 * n0 - n1 * n1
        return n2 * n2  # k == 8: "3*" and "-1" folded into the weights

    # Band-outer loop: one basis plane + 3 accumulators live at a time.
    for k in range(2, 9):
        basis = basis_fn(k)
        acc0 = acc0 + w(k, 0) * basis
        acc1 = acc1 + w(k, 1) * basis
        acc2 = acc2 + w(k, 2) * basis

    mask = alpha > 0.0                       # images[~masks_all] = 0.0
    out_ref[0, 0] = jnp.where(mask, acc0, 0.0).astype(out_ref.dtype)
    out_ref[0, 1] = jnp.where(mask, acc1, 0.0).astype(out_ref.dtype)
    out_ref[0, 2] = jnp.where(mask, acc2, 0.0).astype(out_ref.dtype)
    mask_ref[0, 0] = mask.astype(mask_ref.dtype)


# --------------------------------------------------------------------------
# Wrapper helpers
# --------------------------------------------------------------------------
@functools.lru_cache(maxsize=None)
def _bool_outputs_supported() -> bool:
    """Probe once whether the Pallas TPU backend accepts bool outputs."""
    def probe_kernel(o_ref):
        col = jax.lax.broadcasted_iota(jnp.int32, o_ref.shape, dimension=1)
        o_ref[...] = col > -1

    try:
        out = pl.pallas_call(
            probe_kernel,
            out_shape=jax.ShapeDtypeStruct((8, 128), jnp.bool_),
        )()
        jax.block_until_ready(out)
        return True
    except Exception:
        return False


def _pick_row_tile(num_rows: int, batch: int, target: int = 1024,
                   min_grid_steps: int = 8) -> int:
    """Row tile (second-to-last block dim).

    ~1024x128 f32 lanes per channel -> ~3.6 MiB per step (~7.3 MiB double
    buffered): safe from v5e's 16 MiB scoped default up to v7x's 64 MiB
    physical VMEM while amortizing the ~0.35 us per-grid-step overhead.
    Shrinks the tile when B * cdiv(R, tR) would starve a v7x TensorCore
    (2 TCs share the parallel grid).  Multiples of 32 keep the 8-bit mask
    sublane packing clean; the full extent is always legal.
    """
    if num_rows <= 32:
        return num_rows
    tr = min(num_rows, target)
    tr = max(32, (tr // 32) * 32)
    while tr > 64 and batch * pl.cdiv(num_rows, tr) < min_grid_steps:
        tr = max(32, ((tr // 2) // 32) * 32)
    return tr


def sh_shade_and_mask(planar_rgba, sh_coeff, constant_factor, *,
                      out_dtype=jnp.float32, target_rows=1024):
    """planar_rgba: (B,4,H,W) f32 (channels 0..2 = RGB/"normal" planes,
    channel 3 = rasterizer alpha); sh_coeff: (B,9,3) f32.

    Returns (shaded_masked_images (B,3,H,W) out_dtype, masks_all (B,1,H,W) bool).
    Compute is always f32; pass out_dtype=jnp.bfloat16 to halve the output
    write traffic (v6e/v7x) when the consumer tolerates it.
    """
    B, C, H, W = planar_rgba.shape
    assert C == 4 and sh_coeff.shape == (B, 9, 3)

    HW = H * W
    HW_pad = ((HW + 127) // 128) * 128
    x = planar_rgba.reshape(B, 4, HW)
    if HW_pad != HW:
        # Zero padding: padded pixels get alpha == 0 -> mask == 0; they are
        # sliced away below.  Only non-multiple-of-128 images pay this copy.
        x = jnp.pad(x, ((0, 0), (0, 0), (0, HW_pad - HW)))
    R = HW_pad // 128
    x = x.reshape(B, 4, R, 128)          # lane-dense: unmasked full-vreg I/O

    # Pre-weight by the SH constants and fold bands outside the kernel:
    #   w0c <- w0c - w8c     (absorbs the "-1" of band 8 into band 0)
    #   w8c <- 3 * w8c       (basis_8 becomes plain n2*n2 in-kernel)
    w = sh_coeff.astype(jnp.float32) * constant_factor[None, :, None]   # (B,9,3)
    w = w.at[:, 0, :].add(-w[:, 8, :])
    w = w.at[:, 8, :].multiply(3.0)
    w_flat = w.reshape(B * 27)           # 1D SMEM: avoids 2D row padding

    mask_dtype = jnp.bool_ if _bool_outputs_supported() else jnp.uint8

    tR = _pick_row_tile(R, B, target_rows)
    grid = (B, pl.cdiv(R, tR))

    bytes_px = 16 + jnp.dtype(out_dtype).itemsize * 3 + 1
    cost = pl.CostEstimate(flops=int(60 * B * HW), transcendentals=0,
                           bytes_accessed=int(bytes_px * B * HW))

    shaded, mask = pl.pallas_call(
        _sh_light_kernel,
        out_shape=(
            jax.ShapeDtypeStruct((B, 3, R, 128), out_dtype),
            jax.ShapeDtypeStruct((B, 1, R, 128), mask_dtype),
        ),
        grid=grid,
        in_specs=[
            pl.BlockSpec(memory_space=pltpu.SMEM),                    # (B*27,)
            pl.BlockSpec((1, 4, tR, 128), lambda b, r: (b, 0, r, 0)), # RGBA
        ],
        out_specs=(
            pl.BlockSpec((1, 3, tR, 128), lambda b, r: (b, 0, r, 0)), # shaded
            pl.BlockSpec((1, 1, tR, 128), lambda b, r: (b, 0, r, 0)), # mask
        ),
        compiler_params=pltpu.CompilerParams(
            dimension_semantics=("parallel", "parallel"),
            vmem_limit_bytes=32 * 1024 * 1024,
        ),
        cost_estimate=cost,
    )(w_flat, x)

    shaded = shaded.reshape(B, 3, HW_pad)[:, :, :HW].reshape(B, 3, H, W)
    mask = mask.reshape(B, 1, HW_pad)[:, :, :HW].reshape(B, 1, H, W)
    if mask.dtype != jnp.bool_:
        mask = mask.astype(jnp.bool_)    # fallback path only
    return shaded, mask


class TextureRendererPallas:
    """JAX/Pallas counterpart of TextureRenderer's tensor math.

    The mesh/camera/rasterizer construction in the original __init__ depends
    on an .obj file / PyTorch3D structures; the deterministic parameter the
    forward math actually uses is `constant_factor` (the 9 SH constants).
    """

    def __init__(self):
        self.constant_factor = jnp.asarray(_sh_constant_factor())

    def add_SHlight_and_mask(self, planar_rgba, sh_coeff, **kw):
        return sh_shade_and_mask(planar_rgba, sh_coeff, self.constant_factor, **kw)

    def forward(self, image_ref, lights=None):
        """image_ref: (B, H, W, 4) RGBA buffer (what the PyTorch3D phong
        renderer would have produced); lights: (B, 9, 3) SH coefficients."""
        # TODO(synk): PyTorch3D PerspectiveCameras / MeshRasterizer /
        # SoftPhongShader / SoftSilhouetteShader (hence masks_face) have no
        # Pallas equivalent; the kernel consumes the pre-rasterized RGBA buffer.
        # TODO(synk): this single fused NHWC->NCHW transpose is the one
        # remaining extra HBM pass; the clean fix is an upstream renderer that
        # emits planar RGBA (feed it straight to sh_shade_and_mask).  An
        # in-kernel stride-4 lane de-interleave of the raw RGBA tile was
        # evaluated but needs lane-splitting reshapes with real Mosaic
        # lowering risk, so it is deliberately not used here.
        planar = jnp.transpose(image_ref, (0, 3, 1, 2))   # (B, 4, H, W)
        if lights is not None:
            images, masks_all = self.add_SHlight_and_mask(planar, lights)
        else:
            images = planar[:, :3]
            masks_all = planar[:, 3:] > 0.0
        masks_face = None
        return images, masks_all, masks_face


# ----------------------------- reference (plain JAX) -------------------------
def _ref_add_shlight(normal_images, sh_coeff, const):
    N = normal_images
    sh = jnp.stack(
        [
            N[:, 0] * 0.0 + 1.0,
            N[:, 0],
            N[:, 1],
            N[:, 2],
            N[:, 0] * N[:, 1],
            N[:, 0] * N[:, 2],
            N[:, 1] * N[:, 2],
            N[:, 0] ** 2 - N[:, 1] ** 2,
            3 * N[:, 2] ** 2 - 1,
        ],
        1,
    )
    sh = sh * const[None, :, None, None]
    return jnp.sum(sh_coeff[:, :, :, None, None] * sh[:, :, None, :, :], 1)


if __name__ == "__main__":
    key = jax.random.PRNGKey(0)
    k1, k2, k3 = jax.random.split(key, 3)

    B, H, W = 2, 16, 16
    rgb = jax.random.uniform(k1, (B, H, W, 3), dtype=jnp.float32)
    # alpha channel: ~half the pixels covered, rest background (alpha == 0)
    alpha = (jax.random.uniform(k2, (B, H, W, 1), dtype=jnp.float32) > 0.5).astype(
        jnp.float32
    )
    image_ref = jnp.concatenate([rgb, alpha], axis=-1)            # (B, H, W, 4)
    lights = jax.random.normal(k3, (B, 9, 3), dtype=jnp.float32)  # SH coeffs

    renderer = TextureRendererPallas()
    images, masks_all, masks_face = renderer.forward(image_ref, lights=lights)
    images = jax.block_until_ready(images)
    masks_all = jax.block_until_ready(masks_all)

    # plain-JAX reference for the SH-lighting + masking path
    images_nchw = jnp.transpose(image_ref[..., :3], (0, 3, 1, 2))
    alpha_nchw = jnp.transpose(image_ref[..., 3:], (0, 3, 1, 2))
    ref = _ref_add_shlight(images_nchw, lights, renderer.constant_factor)
    ref = jnp.where(alpha_nchw > 0.0, ref, 0.0)
    ref_mask = alpha_nchw > 0.0

    assert images.shape == (B, 3, H, W)
    assert masks_all.shape == (B, 1, H, W) and masks_all.dtype == jnp.bool_
    np.testing.assert_allclose(np.asarray(images), np.asarray(ref),
                               rtol=1e-5, atol=1e-5)
    np.testing.assert_array_equal(np.asarray(masks_all), np.asarray(ref_mask))

    print("KERNEL_OK")
</pallas_src>

<mosaic_0001>
module attributes {stable_mosaic.version = 11 : i64} {
  func.func @_sh_light_kernel(%arg0: i32, %arg1: i32, %arg2: memref<54xf32, #tpu.memory_space<smem>>, %arg3: memref<1x4x2x128xf32, #tpu.memory_space<vmem>>, %arg4: memref<1x3x2x128xf32, #tpu.memory_space<vmem>>, %arg5: memref<1x1x2x128xi8, #tpu.memory_space<vmem>>) attributes {dimension_semantics = [#tpu.dimension_semantics<parallel>, #tpu.dimension_semantics<parallel>], iteration_bounds = array<i64: 2, 1>, scalar_prefetch = 0 : i64, scratch_operands = 0 : i64, tpu.core_type = #tpu.core_type<tc>, window_params = [{transform_indices = @transform_0, window_bounds = array<i64: 54>}, {transform_indices = @transform_1, window_bounds = array<i64: 1, 4, 2, 128>}, {transform_indices = @transform_2, window_bounds = array<i64: 1, 3, 2, 128>}, {transform_indices = @transform_3, window_bounds = array<i64: 1, 1, 2, 128>}]} {
    %c0 = arith.constant 0 : index
    %c0_0 = arith.constant 0 : index
    %c0_1 = arith.constant 0 : index
    %c0_2 = arith.constant 0 : index
    %0 = vector.load %arg3[%c0, %c0_0, %c0_1, %c0_2] : memref<1x4x2x128xf32, #tpu.memory_space<vmem>>, vector<1x1x2x128xf32>
    %1 = vector.shape_cast %0 : vector<1x1x2x128xf32> to vector<2x128xf32>
    %c0_3 = arith.constant 0 : index
    %c1 = arith.constant 1 : index
    %c0_4 = arith.constant 0 : index
    %c0_5 = arith.constant 0 : index
    %2 = vector.load %arg3[%c0_3, %c1, %c0_4, %c0_5] : memref<1x4x2x128xf32, #tpu.memory_space<vmem>>, vector<1x1x2x128xf32>
    %3 = vector.shape_cast %2 : vector<1x1x2x128xf32> to vector<2x128xf32>
    %c0_6 = arith.constant 0 : index
    %c2 = arith.constant 2 : index
    %c0_7 = arith.constant 0 : index
    %c0_8 = arith.constant 0 : index
    %4 = vector.load %arg3[%c0_6, %c2, %c0_7, %c0_8] : memref<1x4x2x128xf32, #tpu.memory_space<vmem>>, vector<1x1x2x128xf32>
    %5 = vector.shape_cast %4 : vector<1x1x2x128xf32> to vector<2x128xf32>
    %c0_9 = arith.constant 0 : index
    %c3 = arith.constant 3 : index
    %c0_10 = arith.constant 0 : index
    %c0_11 = arith.constant 0 : index
    %6 = vector.load %arg3[%c0_9, %c3, %c0_10, %c0_11] : memref<1x4x2x128xf32, #tpu.memory_space<vmem>>, vector<1x1x2x128xf32>
    %7 = vector.shape_cast %6 : vector<1x1x2x128xf32> to vector<2x128xf32>
    %c27_i32 = arith.constant 27 : i32
    %8 = arith.muli %arg0, %c27_i32 : i32
    %c3_i32 = arith.constant 3 : i32
    %9 = arith.addi %8, %c3_i32 : i32
    %c0_i32 = arith.constant 0 : i32
    %10 = arith.addi %9, %c0_i32 : i32
    %11 = arith.index_cast %10 : i32 to index
    %12 = memref.load %arg2[%11] : memref<54xf32, #tpu.memory_space<smem>>
    %13 = vector.broadcast %12 : f32 to vector<2x128xf32>
    %14 = arith.mulf %1, %13 : vector<2x128xf32>
    %c27_i32_12 = arith.constant 27 : i32
    %15 = arith.muli %arg0, %c27_i32_12 : i32
    %c0_i32_13 = arith.constant 0 : i32
    %16 = arith.addi %15, %c0_i32_13 : i32
    %c0_i32_14 = arith.constant 0 : i32
    %17 = arith.addi %16, %c0_i32_14 : i32
    %18 = arith.index_cast %17 : i32 to index
    %19 = memref.load %arg2[%18] : memref<54xf32, #tpu.memory_space<smem>>
    %20 = vector.broadcast %19 : f32 to vector<2x128xf32>
    %21 = arith.addf %14, %20 : vector<2x128xf32>
    %c27_i32_15 = arith.constant 27 : i32
    %22 = arith.muli %arg0, %c27_i32_15 : i32
    %c3_i32_16 = arith.constant 3 : i32
    %23 = arith.addi %22, %c3_i32_16 : i32
    %c1_i32 = arith.constant 1 : i32
    %24 = arith.addi %23, %c1_i32 : i32
    %25 = arith.index_cast %24 : i32 to index
    %26 = memref.load %arg2[%25] : memref<54xf32, #tpu.memory_space<smem>>
    %27 = vector.broadcast %26 : f32 to vector<2x128xf32>
    %28 = arith.mulf %1, %27 : vector<2x128xf32>
    %c27_i32_17 = arith.constant 27 : i32
    %29 = arith.muli %arg0, %c27_i32_17 : i32
    %c0_i32_18 = arith.constant 0 : i32
    %30 = arith.addi %29, %c0_i32_18 : i32
    %c1_i32_19 = arith.constant 1 : i32
    %31 = arith.addi %30, %c1_i32_19 : i32
    %32 = arith.index_cast %31 : i32 to index
    %33 = memref.load %arg2[%32] : memref<54xf32, #tpu.memory_space<smem>>
    %34 = vector.broadcast %33 : f32 to vector<2x128xf32>
    %35 = arith.addf %28, %34 : vector<2x128xf32>
    %c27_i32_20 = arith.constant 27 : i32
    %36 = arith.muli %arg0, %c27_i32_20 : i32
    %c3_i32_21 = arith.constant 3 : i32
    %37 = arith.addi %36, %c3_i32_21 : i32
    %c2_i32 = arith.constant 2 : i32
    %38 = arith.addi %37, %c2_i32 : i32
    %39 = arith.index_cast %38 : i32 to index
    %40 = memref.load %arg2[%39] : memref<54xf32, #tpu.memory_space<smem>>
    %41 = vector.broadcast %40 : f32 to vector<2x128xf32>
    %42 = arith.mulf %1, %41 : vector<2x128xf32>
    %c27_i32_22 = arith.constant 27 : i32
    %43 = arith.muli %arg0, %c27_i32_22 : i32
    %c0_i32_23 = arith.constant 0 : i32
    %44 = arith.addi %43, %c0_i32_23 : i32
    %c2_i32_24 = arith.constant 2 : i32
    %45 = arith.addi %44, %c2_i32_24 : i32
    %46 = arith.index_cast %45 : i32 to index
    %47 = memref.load %arg2[%46] : memref<54xf32, #tpu.memory_space<smem>>
    %48 = vector.broadcast %47 : f32 to vector<2x128xf32>
    %49 = arith.addf %42, %48 : vector<2x128xf32>
    %c27_i32_25 = arith.constant 27 : i32
    %50 = arith.muli %arg0, %c27_i32_25 : i32
    %c6_i32 = arith.constant 6 : i32
    %51 = arith.addi %50, %c6_i32 : i32
    %c0_i32_26 = arith.constant 0 : i32
    %52 = arith.addi %51, %c0_i32_26 : i32
    %53 = arith.index_cast %52 : i32 to index
    %54 = memref.load %arg2[%53] : memref<54xf32, #tpu.memory_space<smem>>
    %55 = vector.broadcast %54 : f32 to vector<2x128xf32>
    %56 = arith.mulf %55, %3 : vector<2x128xf32>
    %57 = arith.addf %21, %56 : vector<2x128xf32>
    %c27_i32_27 = arith.constant 27 : i32
    %58 = arith.muli %arg0, %c27_i32_27 : i32
    %c6_i32_28 = arith.constant 6 : i32
    %59 = arith.addi %58, %c6_i32_28 : i32
    %c1_i32_29 = arith.constant 1 : i32
    %60 = arith.addi %59, %c1_i32_29 : i32
    %61 = arith.index_cast %60 : i32 to index
    %62 = memref.load %arg2[%61] : memref<54xf32, #tpu.memory_space<smem>>
    %63 = vector.broadcast %62 : f32 to vector<2x128xf32>
    %64 = arith.mulf %63, %3 : vector<2x128xf32>
    %65 = arith.addf %35, %64 : vector<2x128xf32>
    %c27_i32_30 = arith.constant 27 : i32
    %66 = arith.muli %arg0, %c27_i32_30 : i32
    %c6_i32_31 = arith.constant 6 : i32
    %67 = arith.addi %66, %c6_i32_31 : i32
    %c2_i32_32 = arith.constant 2 : i32
    %68 = arith.addi %67, %c2_i32_32 : i32
    %69 = arith.index_cast %68 : i32 to index
    %70 = memref.load %arg2[%69] : memref<54xf32, #tpu.memory_space<smem>>
    %71 = vector.broadcast %70 : f32 to vector<2x128xf32>
    %72 = arith.mulf %71, %3 : vector<2x128xf32>
    %73 = arith.addf %49, %72 : vector<2x128xf32>
    %c27_i32_33 = arith.constant 27 : i32
    %74 = arith.muli %arg0, %c27_i32_33 : i32
    %c9_i32 = arith.constant 9 : i32
    %75 = arith.addi %74, %c9_i32 : i32
    %c0_i32_34 = arith.constant 0 : i32
    %76 = arith.addi %75, %c0_i32_34 : i32
    %77 = arith.index_cast %76 : i32 to index
    %78 = memref.load %arg2[%77] : memref<54xf32, #tpu.memory_space<smem>>
    %79 = vector.broadcast %78 : f32 to vector<2x128xf32>
    %80 = arith.mulf %79, %5 : vector<2x128xf32>
    %81 = arith.addf %57, %80 : vector<2x128xf32>
    %c27_i32_35 = arith.constant 27 : i32
    %82 = arith.muli %arg0, %c27_i32_35 : i32
    %c9_i32_36 = arith.constant 9 : i32
    %83 = arith.addi %82, %c9_i32_36 : i32
    %c1_i32_37 = arith.constant 1 : i32
    %84 = arith.addi %83, %c1_i32_37 : i32
    %85 = arith.index_cast %84 : i32 to index
    %86 = memref.load %arg2[%85] : memref<54xf32, #tpu.memory_space<smem>>
    %87 = vector.broadcast %86 : f32 to vector<2x128xf32>
    %88 = arith.mulf %87, %5 : vector<2x128xf32>
    %89 = arith.addf %65, %88 : vector<2x128xf32>
    %c27_i32_38 = arith.constant 27 : i32
    %90 = arith.muli %arg0, %c27_i32_38 : i32
    %c9_i32_39 = arith.constant 9 : i32
    %91 = arith.addi %90, %c9_i32_39 : i32
    %c2_i32_40 = arith.constant 2 : i32
    %92 = arith.addi %91, %c2_i32_40 : i32
    %93 = arith.index_cast %92 : i32 to index
    %94 = memref.load %arg2[%93] : memref<54xf32, #tpu.memory_space<smem>>
    %95 = vector.broadcast %94 : f32 to vector<2x128xf32>
    %96 = arith.mulf %95, %5 : vector<2x128xf32>
    %97 = arith.addf %73, %96 : vector<2x128xf32>
    %98 = arith.mulf %1, %3 : vector<2x128xf32>
    %c27_i32_41 = arith.constant 27 : i32
    %99 = arith.muli %arg0, %c27_i32_41 : i32
    %c12_i32 = arith.constant 12 : i32
    %100 = arith.addi %99, %c12_i32 : i32
    %c0_i32_42 = arith.constant 0 : i32
    %101 = arith.addi %100, %c0_i32_42 : i32
    %102 = arith.index_cast %101 : i32 to index
    %103 = memref.load %arg2[%102] : memref<54xf32, #tpu.memory_space<smem>>
    %104 = vector.broadcast %103 : f32 to vector<2x128xf32>
    %105 = arith.mulf %104, %98 : vector<2x128xf32>
    %106 = arith.addf %81, %105 : vector<2x128xf32>
    %c27_i32_43 = arith.constant 27 : i32
    %107 = arith.muli %arg0, %c27_i32_43 : i32
    %c12_i32_44 = arith.constant 12 : i32
    %108 = arith.addi %107, %c12_i32_44 : i32
    %c1_i32_45 = arith.constant 1 : i32
    %109 = arith.addi %108, %c1_i32_45 : i32
    %110 = arith.index_cast %109 : i32 to index
    %111 = memref.load %arg2[%110] : memref<54xf32, #tpu.memory_space<smem>>
    %112 = vector.broadcast %111 : f32 to vector<2x128xf32>
    %113 = arith.mulf %112, %98 : vector<2x128xf32>
    %114 = arith.addf %89, %113 : vector<2x128xf32>
    %c27_i32_46 = arith.constant 27 : i32
    %115 = arith.muli %arg0, %c27_i32_46 : i32
    %c12_i32_47 = arith.constant 12 : i32
    %116 = arith.addi %115, %c12_i32_47 : i32
    %c2_i32_48 = arith.constant 2 : i32
    %117 = arith.addi %116, %c2_i32_48 : i32
    %118 = arith.index_cast %117 : i32 to index
    %119 = memref.load %arg2[%118] : memref<54xf32, #tpu.memory_space<smem>>
    %120 = vector.broadcast %119 : f32 to vector<2x128xf32>
    %121 = arith.mulf %120, %98 : vector<2x128xf32>
    %122 = arith.addf %97, %121 : vector<2x128xf32>
    %123 = arith.mulf %1, %5 : vector<2x128xf32>
    %c27_i32_49 = arith.constant 27 : i32
    %124 = arith.muli %arg0, %c27_i32_49 : i32
    %c15_i32 = arith.constant 15 : i32
    %125 = arith.addi %124, %c15_i32 : i32
    %c0_i32_50 = arith.constant 0 : i32
    %126 = arith.addi %125, %c0_i32_50 : i32
    %127 = arith.index_cast %126 : i32 to index
    %128 = memref.load %arg2[%127] : memref<54xf32, #tpu.memory_space<smem>>
    %129 = vector.broadcast %128 : f32 to vector<2x128xf32>
    %130 = arith.mulf %129, %123 : vector<2x128xf32>
    %131 = arith.addf %106, %130 : vector<2x128xf32>
    %c27_i32_51 = arith.constant 27 : i32
    %132 = arith.muli %arg0, %c27_i32_51 : i32
    %c15_i32_52 = arith.constant 15 : i32
    %133 = arith.addi %132, %c15_i32_52 : i32
    %c1_i32_53 = arith.constant 1 : i32
    %134 = arith.addi %133, %c1_i32_53 : i32
    %135 = arith.index_cast %134 : i32 to index
    %136 = memref.load %arg2[%135] : memref<54xf32, #tpu.memory_space<smem>>
    %137 = vector.broadcast %136 : f32 to vector<2x128xf32>
    %138 = arith.mulf %137, %123 : vector<2x128xf32>
    %139 = arith.addf %114, %138 : vector<2x128xf32>
    %c27_i32_54 = arith.constant 27 : i32
    %140 = arith.muli %arg0, %c27_i32_54 : i32
    %c15_i32_55 = arith.constant 15 : i32
    %141 = arith.addi %140, %c15_i32_55 : i32
    %c2_i32_56 = arith.constant 2 : i32
    %142 = arith.addi %141, %c2_i32_56 : i32
    %143 = arith.index_cast %142 : i32 to index
    %144 = memref.load %arg2[%143] : memref<54xf32, #tpu.memory_space<smem>>
    %145 = vector.broadcast %144 : f32 to vector<2x128xf32>
    %146 = arith.mulf %145, %123 : vector<2x128xf32>
    %147 = arith.addf %122, %146 : vector<2x128xf32>
    %148 = arith.mulf %3, %5 : vector<2x128xf32>
    %c27_i32_57 = arith.constant 27 : i32
    %149 = arith.muli %arg0, %c27_i32_57 : i32
    %c18_i32 = arith.constant 18 : i32
    %150 = arith.addi %149, %c18_i32 : i32
    %c0_i32_58 = arith.constant 0 : i32
    %151 = arith.addi %150, %c0_i32_58 : i32
    %152 = arith.index_cast %151 : i32 to index
    %153 = memref.load %arg2[%152] : memref<54xf32, #tpu.memory_space<smem>>
    %154 = vector.broadcast %153 : f32 to vector<2x128xf32>
    %155 = arith.mulf %154, %148 : vector<2x128xf32>
    %156 = arith.addf %131, %155 : vector<2x128xf32>
    %c27_i32_59 = arith.constant 27 : i32
    %157 = arith.muli %arg0, %c27_i32_59 : i32
    %c18_i32_60 = arith.constant 18 : i32
    %158 = arith.addi %157, %c18_i32_60 : i32
    %c1_i32_61 = arith.constant 1 : i32
    %159 = arith.addi %158, %c1_i32_61 : i32
    %160 = arith.index_cast %159 : i32 to index
    %161 = memref.load %arg2[%160] : memref<54xf32, #tpu.memory_space<smem>>
    %162 = vector.broadcast %161 : f32 to vector<2x128xf32>
    %163 = arith.mulf %162, %148 : vector<2x128xf32>
    %164 = arith.addf %139, %163 : vector<2x128xf32>
    %c27_i32_62 = arith.constant 27 : i32
    %165 = arith.muli %arg0, %c27_i32_62 : i32
    %c18_i32_63 = arith.constant 18 : i32
    %166 = arith.addi %165, %c18_i32_63 : i32
    %c2_i32_64 = arith.constant 2 : i32
    %167 = arith.addi %166, %c2_i32_64 : i32
    %168 = arith.index_cast %167 : i32 to index
    %169 = memref.load %arg2[%168] : memref<54xf32, #tpu.memory_space<smem>>
    %170 = vector.broadcast %169 : f32 to vector<2x128xf32>
    %171 = arith.mulf %170, %148 : vector<2x128xf32>
    %172 = arith.addf %147, %171 : vector<2x128xf32>
    %173 = arith.mulf %1, %1 : vector<2x128xf32>
    %174 = arith.mulf %3, %3 : vector<2x128xf32>
    %175 = arith.subf %173, %174 : vector<2x128xf32>
    %c27_i32_65 = arith.constant 27 : i32
    %176 = arith.muli %arg0, %c27_i32_65 : i32
    %c21_i32 = arith.constant 21 : i32
    %177 = arith.addi %176, %c21_i32 : i32
    %c0_i32_66 = arith.constant 0 : i32
    %178 = arith.addi %177, %c0_i32_66 : i32
    %179 = arith.index_cast %178 : i32 to index
    %180 = memref.load %arg2[%179] : memref<54xf32, #tpu.memory_space<smem>>
    %181 = vector.broadcast %180 : f32 to vector<2x128xf32>
    %182 = arith.mulf %181, %175 : vector<2x128xf32>
    %183 = arith.addf %156, %182 : vector<2x128xf32>
    %c27_i32_67 = arith.constant 27 : i32
    %184 = arith.muli %arg0, %c27_i32_67 : i32
    %c21_i32_68 = arith.constant 21 : i32
    %185 = arith.addi %184, %c21_i32_68 : i32
    %c1_i32_69 = arith.constant 1 : i32
    %186 = arith.addi %185, %c1_i32_69 : i32
    %187 = arith.index_cast %186 : i32 to index
    %188 = memref.load %arg2[%187] : memref<54xf32, #tpu.memory_space<smem>>
    %189 = vector.broadcast %188 : f32 to vector<2x128xf32>
    %190 = arith.mulf %189, %175 : vector<2x128xf32>
    %191 = arith.addf %164, %190 : vector<2x128xf32>
    %c27_i32_70 = arith.constant 27 : i32
    %192 = arith.muli %arg0, %c27_i32_70 : i32
    %c21_i32_71 = arith.constant 21 : i32
    %193 = arith.addi %192, %c21_i32_71 : i32
    %c2_i32_72 = arith.constant 2 : i32
    %194 = arith.addi %193, %c2_i32_72 : i32
    %195 = arith.index_cast %194 : i32 to index
    %196 = memref.load %arg2[%195] : memref<54xf32, #tpu.memory_space<smem>>
    %197 = vector.broadcast %196 : f32 to vector<2x128xf32>
    %198 = arith.mulf %197, %175 : vector<2x128xf32>
    %199 = arith.addf %172, %198 : vector<2x128xf32>
    %200 = arith.mulf %5, %5 : vector<2x128xf32>
    %c27_i32_73 = arith.constant 27 : i32
    %201 = arith.muli %arg0, %c27_i32_73 : i32
    %c24_i32 = arith.constant 24 : i32
    %202 = arith.addi %201, %c24_i32 : i32
    %c0_i32_74 = arith.constant 0 : i32
    %203 = arith.addi %202, %c0_i32_74 : i32
    %204 = arith.index_cast %203 : i32 to index
    %205 = memref.load %arg2[%204] : memref<54xf32, #tpu.memory_space<smem>>
    %206 = vector.broadcast %205 : f32 to vector<2x128xf32>
    %207 = arith.mulf %206, %200 : vector<2x128xf32>
    %208 = arith.addf %183, %207 : vector<2x128xf32>
    %c27_i32_75 = arith.constant 27 : i32
    %209 = arith.muli %arg0, %c27_i32_75 : i32
    %c24_i32_76 = arith.constant 24 : i32
    %210 = arith.addi %209, %c24_i32_76 : i32
    %c1_i32_77 = arith.constant 1 : i32
    %211 = arith.addi %210, %c1_i32_77 : i32
    %212 = arith.index_cast %211 : i32 to index
    %213 = memref.load %arg2[%212] : memref<54xf32, #tpu.memory_space<smem>>
    %214 = vector.broadcast %213 : f32 to vector<2x128xf32>
    %215 = arith.mulf %214, %200 : vector<2x128xf32>
    %216 = arith.addf %191, %215 : vector<2x128xf32>
    %c27_i32_78 = arith.constant 27 : i32
    %217 = arith.muli %arg0, %c27_i32_78 : i32
    %c24_i32_79 = arith.constant 24 : i32
    %218 = arith.addi %217, %c24_i32_79 : i32
    %c2_i32_80 = arith.constant 2 : i32
    %219 = arith.addi %218, %c2_i32_80 : i32
    %220 = arith.index_cast %219 : i32 to index
    %221 = memref.load %arg2[%220] : memref<54xf32, #tpu.memory_space<smem>>
    %222 = vector.broadcast %221 : f32 to vector<2x128xf32>
    %223 = arith.mulf %222, %200 : vector<2x128xf32>
    %224 = arith.addf %199, %223 : vector<2x128xf32>
    %cst = arith.constant 0.000000e+00 : f32
    %225 = vector.broadcast %cst : f32 to vector<2x128xf32>
    %226 = arith.cmpf ogt, %7, %225 : vector<2x128xf32>
    %cst_81 = arith.constant 0.000000e+00 : f32
    %227 = vector.broadcast %cst_81 : f32 to vector<2x128xf32>
    %228 = arith.select %226, %208, %227 : vector<2x128xi1>, vector<2x128xf32>
    %c0_82 = arith.constant 0 : index
    %c0_83 = arith.constant 0 : index
    %c0_84 = arith.constant 0 : index
    %c0_85 = arith.constant 0 : index
    %229 = vector.load %arg4[%c0_82, %c0_83, %c0_84, %c0_85] : memref<1x3x2x128xf32, #tpu.memory_space<vmem>>, vector<1x1x2x128xf32>
    %230 = vector.shape_cast %229 : vector<1x1x2x128xf32> to vector<2x128xf32>
    %231 = vector.shape_cast %228 : vector<2x128xf32> to vector<1x1x2x128xf32>
    tpu.vector_store %arg4[%c0_82, %c0_83, %c0_84, %c0_85], %231 {strides = array<i32>} : memref<1x3x2x128xf32, #tpu.memory_space<vmem>>, vector<1x1x2x128xf32>,
    %cst_86 = arith.constant 0.000000e+00 : f32
    %232 = vector.broadcast %cst_86 : f32 to vector<2x128xf32>
    %233 = arith.select %226, %216, %232 : vector<2x128xi1>, vector<2x128xf32>
    %c0_87 = arith.constant 0 : index
    %c1_88 = arith.constant 1 : index
    %c0_89 = arith.constant 0 : index
    %c0_90 = arith.constant 0 : index
    %234 = vector.load %arg4[%c0_87, %c1_88, %c0_89, %c0_90] : memref<1x3x2x128xf32, #tpu.memory_space<vmem>>, vector<1x1x2x128xf32>
    %235 = vector.shape_cast %234 : vector<1x1x2x128xf32> to vector<2x128xf32>
    %236 = vector.shape_cast %233 : vector<2x128xf32> to vector<1x1x2x128xf32>
    tpu.vector_store %arg4[%c0_87, %c1_88, %c0_89, %c0_90], %236 {strides = array<i32>} : memref<1x3x2x128xf32, #tpu.memory_space<vmem>>, vector<1x1x2x128xf32>,
    %cst_91 = arith.constant 0.000000e+00 : f32
    %237 = vector.broadcast %cst_91 : f32 to vector<2x128xf32>
    %238 = arith.select %226, %224, %237 : vector<2x128xi1>, vector<2x128xf32>
    %c0_92 = arith.constant 0 : index
    %c2_93 = arith.constant 2 : index
    %c0_94 = arith.constant 0 : index
    %c0_95 = arith.constant 0 : index
    %239 = vector.load %arg4[%c0_92, %c2_93, %c0_94, %c0_95] : memref<1x3x2x128xf32, #tpu.memory_space<vmem>>, vector<1x1x2x128xf32>
    %240 = vector.shape_cast %239 : vector<1x1x2x128xf32> to vector<2x128xf32>
    %241 = vector.shape_cast %238 : vector<2x128xf32> to vector<1x1x2x128xf32>
    tpu.vector_store %arg4[%c0_92, %c2_93, %c0_94, %c0_95], %241 {strides = array<i32>} : memref<1x3x2x128xf32, #tpu.memory_space<vmem>>, vector<1x1x2x128xf32>,
    %242 = arith.extui %226 : vector<2x128xi1> to vector<2x128xi8>
    %c0_96 = arith.constant 0 : index
    %c0_97 = arith.constant 0 : index
    %c0_98 = arith.constant 0 : index
    %c0_99 = arith.constant 0 : index
    %243 = vector.load %arg5[%c0_96, %c0_97, %c0_98, %c0_99] : memref<1x1x2x128xi8, #tpu.memory_space<vmem>>, vector<1x1x2x128xi8>
    %244 = vector.shape_cast %243 : vector<1x1x2x128xi8> to vector<2x128xi8>
    %245 = vector.shape_cast %242 : vector<2x128xi8> to vector<1x1x2x128xi8>
    tpu.vector_store %arg5[%c0_96, %c0_97, %c0_98, %c0_99], %245 {strides = array<i32>} : memref<1x1x2x128xi8, #tpu.memory_space<vmem>>, vector<1x1x2x128xi8>,
    return
  }
  func.func @transform_0(%arg0: i32, %arg1: i32) -> i32 {
    %c0_i32 = arith.constant 0 : i32
    %c0_i32_0 = arith.constant 0 : i32
    return %c0_i32 : i32
  }
  func.func @transform_1(%arg0: i32, %arg1: i32) -> (i32, i32, i32, i32) {
    %c0_i32 = arith.constant 0 : i32
    %c0_i32_0 = arith.constant 0 : i32
    %c0_i32_1 = arith.constant 0 : i32
    return %arg0, %c0_i32, %arg1, %c0_i32_0 : i32, i32, i32, i32
  }
  func.func @transform_2(%arg0: i32, %arg1: i32) -> (i32, i32, i32, i32) {
    %c0_i32 = arith.constant 0 : i32
    %c0_i32_0 = arith.constant 0 : i32
    %c0_i32_1 = arith.constant 0 : i32
    return %arg0, %c0_i32, %arg1, %c0_i32_0 : i32, i32, i32, i32
  }
  func.func @transform_3(%arg0: i32, %arg1: i32) -> (i32, i32, i32, i32) {
    %c0_i32 = arith.constant 0 : i32
    %c0_i32_0 = arith.constant 0 : i32
    %c0_i32_1 = arith.constant 0 : i32
    return %arg0, %c0_i32, %arg1, %c0_i32_0 : i32, i32, i32, i32
  }
}

</mosaic_0001>

<bundles_post_ra>
// kernel: tpu_custom_call.1
= control target key start
LH: loop header
LB: loop body
LE: loop exit
PB: predicated region body
PF: predicated region fallthrough
CT: control target
= control target key end

     0   :  { %9 = vsyncpa [#allocation5], 0  ;;  %s1262_s0 = inlined_call_operand.hbm [shape: f32[54], index: 0, kind: input, shape index: {}]   ;;  %s1263_s1 = inlined_call_operand.hbm [shape: f32[2,4,2,128], index: 1, kind: input, shape index: {}]   ;;  %s1264_s2 = inlined_call_operand.hbm [shape: f32[2,3,2,128], index: 2, kind: output, shape index: {0}]   ;;  %s1265_s3 = inlined_call_operand.hbm [shape: u8[2,1,2,128], index: 3, kind: output, shape index: {1}]  }
   0x1   :  { %10 = vsyncpa [#allocation3], 0 }
   0x2   :  { %12 = vsyncpa [#allocation3 + $0x1], 0 }
   0x3   :  { %13 = vsyncpa [#allocation4], 0 }
   0x4   :  { %15 = vsyncpa [#allocation4 + $0x1], 0 }
   0x5   :  { %16 = vsyncpa [#allocation9], 0 }
   0x6   :  { %18 = vsyncpa [#allocation9 + $0x1], 0  ;;  %s850_s12 = smov 0   ;;  %s852_s13 = smov 0  }
   0x7   :  { %s854_s14 = smov 0   ;;  %s856_s15 = smov 0  }
   0x8   :  { %s858_s16 = smov 0   ;;  %s860_s17 = smov 0  }
   0x9 LB: > { %s552_s18 = sadd.s32 4294967295, %s819_s17   ;;  %s553_s19 = sadd.s32 4294967294, %s819_s17   ;;  %s819_s17 = sphi %s860_s17, %s24_s17   ;;  %s815_s16 = sphi %s858_s16, %s1285_s16   ;;  %s811_s15 = sphi %s856_s15, %s1284_s15   ;;  %s807_s14 = sphi %s854_s14, %s1283_s14   ;;  %s803_s13 = sphi %s852_s13, %s1282_s13   ;;  %s799_s12 = sphi %s850_s12, %s1281_s12  }
   0xa   : > { %s66_s20 = sadd.s32 1, %s807_s14  ;;  %p73_p0 = scmp.ne.s32.totalorder %s807_s14, %s803_s13 }
   0xb   : > { %p74_p1 = scmp.eq.s32.totalorder %s819_s17, 0  ;;  %p79_p2 = scmp.ne.s32.totalorder %s803_s13, %s799_s12 }
   0xc   : > { %p888_p3 = scmp.eq.s32.totalorder %s552_s18, 0  ;;  %p105_p4 = scmp.eq.s32.totalorder %s552_s18, 1 }
   0xd   : > { %p75_p5 = por %p74_p1, %p73_p0  ;;  %p111_p6 = scmp.eq.s32.totalorder %s553_s19, 1 }
   0xe   : > { %s1270_s21 = scalar_select %p888_p3, 1, 0 }
   0xf   : > { %p894_p7 = por %p888_p3, %p79_p2  ;;  %p898_p8 = por %p105_p4, %p73_p0 }
  0x10   : > { %p902_p9 = por %p111_p6, %p79_p2  ;;  %p554_p10 = scmp.ge.s32.totalorder %s819_s17, 1 }
  0x11   : > { %s1271_s22 = scalar_select %p894_p7, 1, 0 }
  0x12   : > { %s1272_s23 = scalar_select %p898_p8, 1, 0 }
  0x13   : > { %s1273_s24 = scalar_select %p902_p9, 1, 0 }
  0x14   : > { %p146_p11 = scmp.lt.s32.totalorder %s819_s17, 3  ;;  %p601_p1 = scmp.lt.s32.totalorder %s819_s17, 2 }
  0x15   : > { %s168_s26 = sand.u32 1, %s807_s14   ;;  %s36_s28 = sadd.s32 1, %s815_s16 }
  0x16   : > { %p909_p13 = pnand %p554_p10, %p146_p11  ;;  %p917_p0 = pnand %p601_p1, %p75_p5 }
  0x17   : > { %s557_s29 = sshll.u32 %s168_s26, 3  ;;  %p38_p4 = scmp.ge.s32.totalorder %s36_s28, 2 }
  0x18   : > { %p585_p7 = pneg %p909_p13  ;;  %s658_s5 = scalar_lea.hbm %s1262_s0, 16 }
  0x19   : > { %p659_p6 = scmp.ne.s32.totalorder %s1262_s0, %s658_s5  ;;  %p665_p5 = scmp.lt.u32.totalorder %s658_s5, %s1262_s0 }
  0x1a   : > { %p586_p2 = pnand %p585_p7, %p888_p3 }
  0x1c   : > { %p660_p10 = pneg %p586_p2 }
  0x1e   : > { %p661_p11 = pnand %p660_p10, %p659_p6 }
  0x20   : > { %p662_p12 = pneg %p661_p11 }
  0x22   : > { %p667_p1 = pnand %p665_p5, %p662_p12 }
  0x24   : > { %670 = shalt.err (!%p667_p1)
}
  0x25   : > { %s821_s10 = smov [#allocation2]   ;;  %s1287_s28 = smov (%p38_p4, %s36_s28), 0 }
  0x26   : > { %588 = dma.hbm_to_smem (!%p586_p2), %s1262_s0, 16, %s821_s10, [#allocation5]  }
  0x27   : > { %s572_s19 = sshll.u32 %s815_s16, 7  ;;  %s61_s30 = ssub.s32 %s815_s16, %s1287_s28 }
  0x28   : > { %s944_s6 = scalar_lea.hbm %s1263_s1, %s572_s19  ;;  %p64_p7 = scmp.eq.s32.totalorder %s61_s30, 0 }
  0x29   : > { %s172_s7 = scalar_lea.vmem [#allocation6], %s557_s29  ;;  %s953_s10 = scalar_lea.sflag [#allocation3], %s168_s26 }
  0x2a   : > { %s180_s8 = sshll.u32 %s172_s7, 4  ;;  %s671_s11 = scalar_lea.hbm %s944_s6, 128  ;;  %s946_s8 = int_to_ptr.vmem [resolvable:$true] %s180_s8 }
  0x2b   : > { %s951_s9 = scalar_select %p64_p7, %s807_s14, %s66_s20  }
  0x2c   : > { %p672_p12 = scmp.ne.s32.totalorder %s944_s6, %s671_s11  ;;  %p673_p2 = pneg %p917_p0 }
  0x2d   : > { %s676_s29 = scalar_lea.hbm %s1263_s1, 256  ;;  %p677_p10 = scmp.lt.u32.totalorder %s944_s6, %s1263_s1 }
  0x2e   : > { %p674_p4 = pnand %p673_p2, %p672_p12  ;;  %p678_p11 = scmp.lt.u32.totalorder %s676_s29, %s671_s11 }
  0x2f   : > { %p680_p1 = scmp.lt.u32.totalorder %s671_s11, %s944_s6 }
  0x30   : > { %p675_p6 = pneg %p674_p4  ;;  %p679_p5 = por %p678_p11, %p677_p10 }
  0x32   : > { %p681_p7 = por %p680_p1, %p679_p5 }
  0x34   : > { %p682_p9 = pnand %p681_p7, %p675_p6 }
  0x36   : > { %685 = shalt.err (!%p682_p9)
}
  0x37   : > { %s686_s20 = scalar_lea.vmem %s946_s8, 128  ;;  %s822_s26 = smov [#allocation6]  }
  0x38   : > { %p687_p12 = scmp.ne.s32.totalorder %s946_s8, %s686_s20  ;;  %s691_s5 = sshll.u32 %s822_s26, 4  ;;  %s692_s5 = int_to_ptr.vmem [resolvable:$false] %s691_s5 }
  0x39   : > { %s693_s7 = scalar_lea.vmem %s692_s5, 256  ;;  %p694_p3 = scmp.lt.s32.totalorder %s946_s8, %s692_s5 }
  0x3a   : > { %p689_p4 = pnand %p687_p12, %p673_p2  ;;  %p695_p10 = scmp.lt.s32.totalorder %s693_s7, %s686_s20 }
  0x3c   : > { %p690_p8 = pneg %p689_p4  ;;  %p696_p11 = por %p695_p10, %p694_p3 }
  0x3e   : > { %p697_p5 = pnand %p696_p11, %p690_p8 }
  0x40   : > { %700 = shalt.err (!%p697_p5)
}
  0x41   : > { %s823_s11 = smov 32   ;;  %s824_s18 = smov 2  }
  0x42   : > { %592 = dma.hbm_to_vmem [thread:$0]  (!%p917_p0), %s944_s6, 128, %s946_s8, %s953_s10, %s823_s11, %s823_s11, %s824_s18  }
  0x43   : > { %192 = sbr.rel (%p909_p13) target bundleno = 161 (0xa1), region = 28  ;;  %p1276_p9 = scmp.ne.s32.totalorder (!%p909_p13), %s1270_s21, 0 }
  0x4a   : > { %782 = dma.done.wait (%p1276_p9), [#allocation5], 16  }
  0x4b   : > { %784 = vsyncadd (%p1276_p9), [#allocation5], 4294967280  ;;  %s988_s19 = sand.u32 1, %s803_s13   ;;  %p1277_p3 = scmp.ne.s32.totalorder %s1271_s22, 0 }
  0x4c   : > { %s562_s29 = sshll.u32 %s988_s19, 3  ;;  %s199_s30 = scalar_lea.sflag [#allocation3], %s988_s19 }
  0x4d   : > { %s992_s4 = scalar_lea.vmem [#allocation6], %s562_s29 }
  0x4e   : > { %786 = dma.done.wait (%p1277_p3), %s199_s30, 128  }
  0x4f   : > { %788 = vsyncadd (%p1277_p3), %s199_s30, 4294967168 }
  0x50   : > { %207 = sfence }
  0x51   : > { %v999_v0 = vld [vmem:[%s992_s4 + $0x6] sm:$0x3]  ;;  %s1002_s21 = smul.u32 27, %s811_s15  ;;  %s1007_s27 = scalar_lea.vmem [#allocation8], %s988_s19  ;;  %vm387_vm2 = vcmask 1040384   ;;  %v825_v2 = vmov 0  }
  0x52   : > { %s573_s25 = smul.u32 6, %s988_s19  ;;  %vm375_vm0 = vcmp.gt.f32.partialorder %v999_v0, 0.0  ;;  %v390_v1 = vld [vmem:[%s1007_s27] sm:$0x1]  ;;  %vm388_vm3 = vsmask.f32 256 }
  0x53   : > { %s240_s22 = sadd.s32 3, %s1002_s21  ;;  %s1012_s6 = sld [smem:[#allocation2 + %s1002_s21]]  ;;  %vm384_vm1 = vmpackc.low %vm375_vm0, %vm375_vm0  ;;  %v1025_v5 = vld [vmem:[%s992_s4] sm:$0x3]  ;;  %v1031_v6 = vld [vmem:[%s992_s4 + $0x2] sm:$0x3] }
  0x54   : > { %s241_s8 = sld [smem:[#allocation2 + %s240_s22]]  ;;  %s263_s10 = sadd.s32 6, %s1002_s21  ;;  %vm385_vm4 = vmpackc.even %vm384_vm1, %vm384_vm1  ;;  %v1037_v7 = vld [vmem:[%s992_s4 + $0x4] sm:$0x3]  ;;  %v1046_v12 = vmul.f32 %v1031_v6, %v1025_v5  ;;  %v341_v15 = vmul.f32 %v1025_v5, %v1025_v5  ;;  %v342_v16 = vmul.f32 %v1031_v6, %v1031_v6 }
  0x55   : > { %s264_s20 = sld [smem:[#allocation2 + %s263_s10]]  ;;  %s278_s26 = sadd.s32 9, %s1002_s21  ;;  %v386_v3 = vsel %vm385_vm4, 16843009, %v825_v2  ;;  %vm389_vm5 = vmand %vm387_vm2, %vm388_vm3  ;;  %v1060_v20 = vmul.f32 %v1037_v7, %v1025_v5  ;;  %v1070_v24 = vmul.f32 %v1037_v7, %v1031_v6  ;;  %v1090_v32 = vmul.f32 %v1037_v7, %v1037_v7 }
  0x56   : > { %s279_s5 = sld [smem:[#allocation2 + %s278_s26]]  ;;  %s294_s7 = sadd.s32 12, %s1002_s21  ;;  %v391_v4 = vsel %vm389_vm5, %v386_v3, %v390_v1  ;;  %v1078_v28 = vsub.f32 %v341_v15, %v342_v16 }
  0x57   : > { %s1020_s11 = sld [smem:[#allocation2 + %s294_s7]]  ;;  %s310_s18 = sadd.s32 15, %s1002_s21  ;;  %392 = vst [vmem:[%s1007_s27] sm:$0x1] %v391_v4 }
  0x58   : > { %s1027_s29 = sld [smem:[#allocation2 + %s310_s18]]  ;;  %s326_s30 = sadd.s32 18, %s1002_s21 }
  0x59   : > { %s1033_s22 = sld [smem:[#allocation2 + %s326_s30]]  ;;  %s344_s10 = sadd.s32 21, %s1002_s21  ;;  %v245_v9 = vstv %s1012_s6 }
  0x5a   : > { %v242_v8 = vstv %s241_s8  ;;  %s1040_s26 = sld [smem:[#allocation2 + %s344_s10]]  ;;  %s360_s7 = sadd.s32 24, %s1002_s21 }
  0x5b   : > { %v243_v10 = vmul.f32 %v242_v8, %v1025_v5  ;;  %v265_v11 = vstv %s264_s20  ;;  %s1053_s4 = sld [smem:[#allocation2 + %s360_s7]]  ;;  %s247_s6 = sadd.s32 4, %s1002_s21 }
  0x5c   : > { %v266_v13 = vmul.f32 %v1031_v6, %v265_v11  ;;  %v280_v14 = vstv %s279_s5  ;;  %s248_s8 = sld [smem:[#allocation2 + %s247_s6]]  ;;  %s251_s20 = sadd.s32 1, %s1002_s21 }
  0x5d   : > { %v246_v17 = vadd.f32 %v245_v9, %v243_v10  ;;  %v281_v18 = vmul.f32 %v1037_v7, %v280_v14  ;;  %v296_v19 = vstv %s1020_s11  ;;  %s1064_s5 = sld [smem:[#allocation2 + %s251_s20]]  ;;  %s268_s18 = sadd.s32 7, %s1002_s21 }
  0x5e   : > { %v312_v21 = vstv %s1027_s29  ;;  %v297_v23 = vmul.f32 %v296_v19, %v1046_v12  ;;  %s269_s11 = sld [smem:[#allocation2 + %s268_s18]]  ;;  %s283_s30 = sadd.s32 10, %s1002_s21 }
  0x5f   : > { %v267_v22 = vadd.f32 %v266_v13, %v246_v17  ;;  %v328_v25 = vstv %s1033_s22  ;;  %s1074_s10 = sld [smem:[#allocation2 + %s283_s30]]  ;;  %s299_s29 = sadd.s32 13, %s1002_s21  ;;  %v313_v27 = vmul.f32 %v312_v21, %v1060_v20 }
  0x60   : > { %s1080_s7 = sld [smem:[#allocation2 + %s299_s29]]  ;;  %s315_s6 = sadd.s32 16, %s1002_s21  ;;  %v346_v29 = vstv %s1040_s26  ;;  %v329_v31 = vmul.f32 %v328_v25, %v1070_v24 }
  0x61   : > { %v282_v26 = vadd.f32 %v281_v18, %v267_v22  ;;  %s1084_s20 = sld [smem:[#allocation2 + %s315_s6]]  ;;  %s331_s18 = sadd.s32 19, %s1002_s21  ;;  %v362_v34 = vstv %s1053_s4  ;;  %v347_v38 = vmul.f32 %v346_v29, %v1078_v28 }
  0x62   : > { %v249_v33 = vstv %s248_s8  ;;  %s1092_s22 = sld [smem:[#allocation2 + %s331_s18]]  ;;  %s349_s30 = sadd.s32 22, %s1002_s21  ;;  %v363_v44 = vmul.f32 %v362_v34, %v1090_v32 }
  0x63   : > { %v298_v30 = vadd.f32 %v297_v23, %v282_v26  ;;  %v250_v35 = vmul.f32 %v249_v33, %v1025_v5  ;;  %v253_v36 = vstv %s1064_s5  ;;  %s1098_s26 = sld [smem:[#allocation2 + %s349_s30]]  ;;  %s365_s29 = sadd.s32 25, %s1002_s21 }
  0x64   : > { %v270_v39 = vstv %s269_s11  ;;  %s1102_s6 = sld [smem:[#allocation2 + %s365_s29]]  ;;  %s255_s8 = sadd.s32 5, %s1002_s21 }
  0x65   : > { %v314_v37 = vadd.f32 %v313_v27, %v298_v30  ;;  %v254_v40 = vadd.f32 %v253_v36, %v250_v35  ;;  %v271_v41 = vmul.f32 %v1031_v6, %v270_v39  ;;  %v285_v42 = vstv %s1074_s10  ;;  %s1107_s4 = sld [smem:[#allocation2 + %s255_s8]]  ;;  %s259_s5 = sadd.s32 2, %s1002_s21 }
  0x66   : > { %v286_v45 = vmul.f32 %v1037_v7, %v285_v42  ;;  %v301_v46 = vstv %s1080_s7  ;;  %s1113_s11 = sld [smem:[#allocation2 + %s259_s5]]  ;;  %s273_s18 = sadd.s32 8, %s1002_s21 }
  0x67   : > { %v330_v43 = vadd.f32 %v329_v31, %v314_v37  ;;  %v272_v47 = vadd.f32 %v271_v41, %v254_v40  ;;  %v302_v48 = vmul.f32 %v301_v46, %v1046_v12  ;;  %v317_v49 = vstv %s1084_s20  ;;  %s1118_s10 = sld [smem:[#allocation2 + %s273_s18]]  ;;  %s288_s30 = sadd.s32 11, %s1002_s21 }
  0x68   : > { %v333_v51 = vstv %s1092_s22  ;;  %s1122_s29 = sld [smem:[#allocation2 + %s288_s30]]  ;;  %s304_s7 = sadd.s32 14, %s1002_s21  ;;  %v318_v53 = vmul.f32 %v317_v49, %v1060_v20 }
  0x69   : > { %v348_v50 = vadd.f32 %v347_v38, %v330_v43  ;;  %v287_v52 = vadd.f32 %v286_v45, %v272_v47  ;;  %s1126_s8 = sld [smem:[#allocation2 + %s304_s7]]  ;;  %s320_s5 = sadd.s32 17, %s1002_s21  ;;  %v351_v55 = vstv %s1098_s26  ;;  %v334_v57 = vmul.f32 %v333_v51, %v1070_v24 }
  0x6a   : > { %s1130_s20 = sld [smem:[#allocation2 + %s320_s5]]  ;;  %s336_s18 = sadd.s32 20, %s1002_s21  ;;  %v367_v60 = vstv %s1102_s6  ;;  %v352_v1 = vmul.f32 %v351_v55, %v1078_v28 }
  0x6b   : > { %v364_v54 = vadd.f32 %v363_v44, %v348_v50  ;;  %v303_v56 = vadd.f32 %v302_v48, %v287_v52  ;;  %v257_v58 = vstv %s1107_s4  ;;  %s1135_s22 = sld [smem:[#allocation2 + %s336_s18]]  ;;  %s354_s30 = sadd.s32 23, %s1002_s21  ;;  %v368_v9 = vmul.f32 %v367_v60, %v1090_v32 }
  0x6c   : > { %v258_v61 = vmul.f32 %v257_v58, %v1025_v5  ;;  %v261_v62 = vstv %s1113_s11  ;;  %s1143_s26 = sld [smem:[#allocation2 + %s354_s30]]  ;;  %s370_s7 = sadd.s32 26, %s1002_s21 }
  0x6d   : > { %v376_v59 = vsel %vm375_vm0, %v364_v54, 0.0  ;;  %s1148_s5 = scalar_lea.vmem [#allocation7], %s573_s25  ;;  %v319_v63 = vadd.f32 %v318_v53, %v303_v56  ;;  %v275_v2 = vstv %s1118_s10  ;;  %s1153_s6 = sld [smem:[#allocation2 + %s370_s7]] }
  0x6e   : > { %377 = vst [vmem:[%s1148_s5] sm:$0x3] %v376_v59  ;;  %v262_v3 = vadd.f32 %v261_v62, %v258_v61  ;;  %v276_v4 = vmul.f32 %v1031_v6, %v275_v2  ;;  %v290_v5 = vstv %s1122_s29  ;;  %s569_s21 = sshll.u32 %s811_s15, 4  ;;  %s429_s25 = sshll.u32 %s1007_s27, 4  ;;  %s1170_s25 = int_to_ptr.vmem [resolvable:$true] %s429_s25 }
  0x6f   : > { %v335_v8 = vadd.f32 %v334_v57, %v319_v63  ;;  %v291_v10 = vmul.f32 %v1037_v7, %v290_v5  ;;  %v306_v11 = vstv %s1126_s8  ;;  %s1168_s10 = scalar_lea.hbm %s1265_s3, %s569_s21  ;;  %s399_s29 = scalar_lea.sflag [#allocation9], %s988_s19 }
  0x70   : > { %v277_v13 = vadd.f32 %v276_v4, %v262_v3  ;;  %v307_v14 = vmul.f32 %v306_v11, %v1046_v12  ;;  %v322_v15 = vstv %s1130_s20  ;;  %s701_s8 = scalar_lea.vmem %s1170_s25, 16  ;;  %p1278_p13 = scmp.ne.s32.totalorder %s1272_s23, 0 }
  0x71   : > { %v353_v16 = vadd.f32 %v352_v1, %v335_v8  ;;  %v338_v17 = vstv %s1135_s22  ;;  %v323_v7 = vmul.f32 %v322_v15, %v1060_v20  ;;  %p702_p8 = scmp.ne.s32.totalorder %s1170_s25, %s701_s8  ;;  %s826_s27 = smov [#allocation8]  }
  0x72   : > { %v292_v6 = vadd.f32 %v291_v10, %v277_v13  ;;  %s705_s20 = sshll.u32 %s826_s27, 4  ;;  %s706_s20 = int_to_ptr.vmem [resolvable:$false] %s705_s20 }
  0x73   : > { %p703_p0 = pnand %p702_p8, %p1278_p13  ;;  %s707_s18 = scalar_lea.vmem %s706_s20, 32 }
  0x74   : > { %p708_p6 = scmp.lt.s32.totalorder %s1170_s25, %s706_s20  ;;  %p709_p1 = scmp.lt.s32.totalorder %s707_s18, %s701_s8 }
  0x75   : > { %p704_p2 = pneg %p703_p0 }
  0x76   : > { %p710_p7 = por %p709_p1, %p708_p6 }
  0x78   : > { %p711_p12 = pnand %p710_p7, %p704_p2 }
  0x7a   : > { %714 = shalt.err (!%p711_p12)
}
  0x7b   : > { %s715_s22 = scalar_lea.hbm %s1168_s10, 16  ;;  %s719_s21 = scalar_lea.hbm %s1265_s3, 32 }
  0x7c   : > { %p716_p4 = scmp.ne.s32.totalorder %s1168_s10, %s715_s22  ;;  %p720_p5 = scmp.lt.u32.totalorder %s1168_s10, %s1265_s3 }
  0x7d   : > { %p721_p9 = scmp.lt.u32.totalorder %s719_s21, %s715_s22  ;;  %p723_p8 = scmp.lt.u32.totalorder %s715_s22, %s1168_s10 }
  0x7e   : > { %p717_p10 = pnand %p716_p4, %p1278_p13 }
  0x7f   : > { %p722_p3 = por %p721_p9, %p720_p5 }
  0x80   : > { %p718_p11 = pneg %p717_p10 }
  0x81   : > { %p724_p0 = por %p723_p8, %p722_p3 }
  0x83   : > { %p725_p2 = pnand %p724_p0, %p718_p11 }
  0x85   : > { %728 = shalt.err (!%p725_p2)
}
  0x86   : > { %582 = dma.vmem_to_hbm [thread:$0]  (%p1278_p13), %s1170_s25, 16, %s1168_s10, %s399_s29   ;;  %v369_v12 = vadd.f32 %v368_v9, %v353_v16  ;;  %v356_v18 = vstv %s1143_s26  ;;  %v308_v19 = vadd.f32 %v307_v14, %v292_v6  ;;  %v339_v20 = vmul.f32 %v338_v17, %v1070_v24 }
  0x87   : > { %v372_v22 = vstv %s1153_s6  ;;  %v357_v25 = vmul.f32 %v356_v18, %v1078_v28  ;;  %s412_s25 = sshll.u32 %s1148_s5, 4  ;;  %s574_s10 = smul.u32 96, %s811_s15  ;;  %s1205_s25 = int_to_ptr.vmem [resolvable:$true] %s412_s25 }
  0x88   : > { %v378_v21 = vsel %vm375_vm0, %v369_v12, 0.0  ;;  %v324_v23 = vadd.f32 %v323_v7, %v308_v19  ;;  %v373_v27 = vmul.f32 %v372_v22, %v1090_v32  ;;  %s394_s8 = scalar_lea.sflag [#allocation4], %s988_s19  ;;  %s729_s27 = scalar_lea.vmem %s1205_s25, 96 }
  0x89   : > { %566 = vst [vmem:[%s1148_s5 + $0x2] sm:$0x3] %v378_v21  ;;  %s1210_s6 = scalar_lea.hbm %s1264_s2, %s574_s10  ;;  %p730_p6 = scmp.ne.s32.totalorder %s1205_s25, %s729_s27 }
  0x8a   : > { %v340_v26 = vadd.f32 %v339_v20, %v324_v23  ;;  %s827_s15 = smov [#allocation7]  }
  0x8b   : > { %p731_p1 = pnand %p730_p6, %p1278_p13  ;;  %s733_s20 = sshll.u32 %s827_s15, 4  ;;  %s734_s20 = int_to_ptr.vmem [resolvable:$false] %s733_s20 }
  0x8c   : > { %v358_v29 = vadd.f32 %v357_v25, %v340_v26  ;;  %s735_s18 = scalar_lea.vmem %s734_s20, 192  ;;  %p736_p12 = scmp.lt.s32.totalorder %s1205_s25, %s734_s20 }
  0x8d   : > { %p732_p7 = pneg %p731_p1  ;;  %p737_p4 = scmp.lt.s32.totalorder %s735_s18, %s729_s27 }
  0x8e   : > { %v374_v24 = vadd.f32 %v373_v27, %v358_v29 }
  0x8f   : > { %p738_p10 = por %p737_p4, %p736_p12 }
  0x90   : > { %v381_v28 = vsel %vm375_vm0, %v374_v24, 0.0 }
  0x91   : > { %567 = vst [vmem:[%s1148_s5 + $0x4] sm:$0x3] %v381_v28  ;;  %p739_p11 = pnand %p738_p10, %p732_p7 }
  0x93   : > { %742 = shalt.err (!%p739_p11)
}
  0x94   : > { %s743_s5 = scalar_lea.hbm %s1210_s6, 96  ;;  %s747_s7 = scalar_lea.hbm %s1264_s2, 192 }
  0x95   : > { %p744_p5 = scmp.ne.s32.totalorder %s1210_s6, %s743_s5  ;;  %p748_p8 = scmp.lt.u32.totalorder %s1210_s6, %s1264_s2 }
  0x96   : > { %p749_p0 = scmp.lt.u32.totalorder %s747_s7, %s743_s5  ;;  %p751_p6 = scmp.lt.u32.totalorder %s743_s5, %s1210_s6 }
  0x97   : > { %p745_p9 = pnand %p744_p5, %p1278_p13 }
  0x98   : > { %p750_p2 = por %p749_p0, %p748_p8 }
  0x99   : > { %p746_p3 = pneg %p745_p9 }
  0x9a   : > { %p752_p1 = por %p751_p6, %p750_p2 }
  0x9c   : > { %p753_p7 = pnand %p752_p1, %p746_p3 }
  0x9e   : > { %756 = shalt.err (!%p753_p7)
}
  0x9f   : > { %s828_s11 = smov 32   ;;  %s829_s10 = smov 2  }
  0xa0   : > { %581 = dma.vmem_to_hbm [thread:$0]  (%p1278_p13), %s1205_s25, 96, %s1210_s6, %s394_s8, %s828_s11, %s828_s11, %s829_s10  }
  0xa1 PF: > { %s441_s26 = sand.u32 1, %s799_s12   ;;  %p1279_p12 = scmp.ne.s32.totalorder %s1273_s24, 0 }
  0xa2   : > { %p1280_p4 = scmp.ge.s32.totalorder %s819_s17, 2  ;;  %s442_s29 = scalar_lea.sflag [#allocation4], %s441_s26 }
  0xa4   : > { %p594_p10 = pnand %p1280_p4, %p1279_p12 }
  0xa6   : > { %790 = dma.done.wait (!%p594_p10), %s442_s29, 96  }
  0xa7   : > { %792 = vsyncadd (!%p594_p10), %s442_s29, 4294967200  ;;  %s451_s27 = scalar_lea.sflag [#allocation9], %s441_s26 }
  0xa8   : > { %794 = dma.done.wait (!%p594_p10), %s451_s27, 16  }
  0xa9   : > { %796 = vsyncadd (!%p594_p10), %s451_s27, 4294967280  ;;  %s24_s17 = sadd.s32 1, %s819_s17   ;;  %s1281_s12 = smov %s803_s13 }
  0xaa   : > { %p21_p11 = scmp.ge.s32.totalorder %s24_s17, 4   ;;  %s1282_s13 = smov %s807_s14 }
  0xab   : > { %s1283_s14 = smov %s951_s9  ;;  %s1284_s15 = smov %s815_s16 }
  0xac   : > { %s1285_s16 = smov %s1287_s28  ;;  %23 = sbr.rel (!%p21_p11) target bundleno = 9 (0x9), region = 100 }
  0xb3   :  { %455 = vsyncpa [#allocation3], 1 }
  0xb4   :  { %457 = vsyncpa [#allocation3 + $0x1], 1 }
  0xb5   :  { %458 = vsyncpa [#allocation4], 1 }
  0xb6   :  { %460 = vsyncpa [#allocation4 + $0x1], 1 }
  0xb7   :  { %461 = vsyncpa [#allocation9], 1 }
  0xb8   :  { %463 = vsyncpa [#allocation9 + $0x1], 1 }
  0xb9   :  { %464 = vsyncpa [#allocation5], 1 }
  0xba   :  { %466 = vsyncpa [#allocation5 + $0x1], 1 }

</bundles_post_ra>
